<compile_context>
chip_gen: v7x
topology: tpu7x:2x2x1
jax: 0.10.0
libtpu: 0.0.40
codegen_flags: <defaults>
</compile_context>

<pallas_src>
import jax
import jax.numpy as jnp
from jax.experimental import pallas as pl
from jax.experimental.pallas import tpu as pltpu


def _adapter_kernel(x_ref, wt_ref, b_ref, o_ref):
    """One (batch, T-tile) grid step.

    x_ref : (1, TT, K)  compute dtype (bf16 by default)
    wt_ref: (H, K)      compute dtype, constant index_map -> VMEM resident
    b_ref : (H, 1)      float32, VMEM resident
    o_ref : (1, H, TT)  output tile, already in the transposed layout
    """
    x = x_ref[0]                         # (TT, K)
    wt = wt_ref[...]                     # (H, K)
    # NT matmul: contract both operands on K. The MXU emits (H, TT) directly,
    # fusing the PyTorch .transpose(1, 2) for free (no XLU accumulator
    # transpose, no extra VMEM temp). f32 accumulation.
    acc = jax.lax.dot_general(
        wt, x,
        dimension_numbers=(((1,), (1,)), ((), ())),
        preferred_element_type=jnp.float32)          # (H, TT)
    acc = acc + b_ref[...]               # (H, 1) bias broadcast over lanes
    o_ref[...] = acc.astype(o_ref.dtype)[None, :, :]


def avhubert_adapter_forward(x, weight, bias, *, tile_t=2048,
                             compute_dtype=jnp.bfloat16, out_dtype=None):
    """AVHuBERT_Adapter forward: (batch, T, K) -> (batch, H, T).

    weight is stored (in_features, out_features) = (K, H); bias is (H,).
    tile_t must be a multiple of 128 (T tiles below 128 use the full dim /
    pad path). compute_dtype=bf16 halves HBM traffic; accumulation is f32.
    """
    if tile_t % 128 != 0:
        raise ValueError(f"tile_t must be a multiple of 128, got {tile_t}")

    batch, T, K = x.shape
    H = weight.shape[1]
    if out_dtype is None:
        out_dtype = x.dtype   # never silently inherit the internal bf16 cast

    # ---- small-T guard: keep output stores lane-dense (last dim >= 128) ----
    if T < 128:
        T_work = 128
        x_work = jnp.pad(x, ((0, 0), (0, T_work - T), (0, 0)))
    else:
        T_work = T
        x_work = x

    # ---- compute-dtype cast (bf16 inputs, f32 accumulate) -------------------
    x_work = x_work.astype(compute_dtype)
    wt = jnp.transpose(weight, (1, 0)).astype(compute_dtype)    # (H, K)
    b_col = bias.astype(jnp.float32).reshape(H, 1)              # (H, 1)

    # ---- T tile selection ----------------------------------------------------
    TT = T_work if T_work <= tile_t else tile_t
    num_t = pl.cdiv(T_work, TT)
    # v7x has 2 TensorCores sharding the "parallel" grid axes: avoid a grid
    # that collapses to a single block when batch is 1 and the tile is huge.
    if batch * num_t < 2 and T_work >= 256:
        TT = pl.cdiv(T_work, 256) * 128     # ~half of T, rounded to 128
        num_t = pl.cdiv(T_work, TT)
    grid = (batch, num_t)

    csize = jnp.dtype(compute_dtype).itemsize
    osize = jnp.dtype(out_dtype).itemsize
    cost = pl.CostEstimate(
        flops=2 * batch * T_work * K * H,
        transcendentals=0,
        bytes_accessed=(batch * T_work * K * csize    # x
                        + K * H * csize               # weight
                        + H * 4                       # bias
                        + batch * H * T_work * osize))  # output

    out = pl.pallas_call(
        _adapter_kernel,
        out_shape=jax.ShapeDtypeStruct((batch, H, T_work), out_dtype),
        grid=grid,
        in_specs=[
            # x tile: one batch row, TT timesteps, full K (double-buffered)
            pl.BlockSpec((1, TT, K), lambda b, t: (b, t, 0)),
            # weight / bias: constant block index -> DMA'd once, VMEM resident
            pl.BlockSpec((H, K), lambda b, t: (0, 0)),
            pl.BlockSpec((H, 1), lambda b, t: (0, 0)),
        ],
        # output written already transposed: (batch, H, T), tiled on last axis
        out_specs=pl.BlockSpec((1, H, TT), lambda b, t: (b, 0, t)),
        compiler_params=pltpu.CompilerParams(
            # no reduction axis -> both axes independent; lets v7x shard
            # across its 2 TensorCores, neutral on v5e/v6e (1 TC).
            dimension_semantics=("parallel", "parallel"),
            # valid on all generations: well under v7x's 64 MiB physical VMEM,
            # above v5e's 16 MiB scoped default. Per-step usage at TT=2048
            # bf16 is ~11 MiB including double buffering.
            vmem_limit_bytes=48 * 1024 * 1024,
        ),
        cost_estimate=cost,
    )(x_work, wt, b_col)

    if T_work != T:
        out = out[:, :, :T]
    return out


def init_adapter_params(key, B=768, H=256, Num_Layers=1, dtype=jnp.float32):
    """Deterministic init matching nn.Linear default (uniform +/- 1/sqrt(fan_in))."""
    in_features = B * Num_Layers
    k_w, k_b = jax.random.split(key)
    bound = 1.0 / jnp.sqrt(jnp.float32(in_features))
    # stored as (in_features, out_features) so the math is x @ W + b
    weight = jax.random.uniform(k_w, (in_features, H), dtype, -bound, bound)
    bias = jax.random.uniform(k_b, (H,), dtype, -bound, bound)
    return weight, bias


if __name__ == "__main__":
    key = jax.random.PRNGKey(0)
    k_params, k_x1, k_x2 = jax.random.split(key, 3)

    B_feat, H, Num_Layers = 768, 256, 1
    in_features = B_feat * Num_Layers

    weight, bias = init_adapter_params(k_params, B=B_feat, H=H,
                                       Num_Layers=Num_Layers)

    def reference(x):
        # reference at the kernel's compute precision (bf16 operands, f32 acc)
        xr = x.astype(jnp.bfloat16).astype(jnp.float32)
        wr = weight.astype(jnp.bfloat16).astype(jnp.float32)
        y = jnp.dot(xr, wr, preferred_element_type=jnp.float32)
        return jnp.transpose(y + bias.astype(jnp.float32), (0, 2, 1))

    # case 1: small streaming shape (T < 128 -> padded lane-dense store path)
    batch, T = 2, 8
    x1 = jax.random.normal(k_x1, (batch, T, in_features), jnp.float32)
    y1 = jax.block_until_ready(avhubert_adapter_forward(x1, weight, bias))
    assert y1.shape == (batch, H, T), y1.shape
    assert y1.dtype == jnp.float32, y1.dtype
    assert jnp.allclose(y1, reference(x1), atol=2e-3, rtol=2e-2)

    # case 2: longer sequence exercising the multi-block tiled path
    batch2, T2 = 1, 384
    x2 = jax.random.normal(k_x2, (batch2, T2, in_features), jnp.float32)
    y2 = jax.block_until_ready(avhubert_adapter_forward(x2, weight, bias))
    assert y2.shape == (batch2, H, T2), y2.shape
    assert jnp.allclose(y2, reference(x2), atol=2e-3, rtol=2e-2)

    print("KERNEL_OK")
</pallas_src>

<mosaic_0001>
module attributes {stable_mosaic.version = 11 : i64} {
  func.func @_adapter_kernel(%arg0: i32, %arg1: i32, %arg2: memref<1x128x768xbf16, #tpu.memory_space<vmem>>, %arg3: memref<256x768xbf16, #tpu.memory_space<vmem>>, %arg4: memref<256x1xf32, #tpu.memory_space<vmem>>, %arg5: memref<1x256x128xf32, #tpu.memory_space<vmem>>) attributes {dimension_semantics = [#tpu.dimension_semantics<parallel>, #tpu.dimension_semantics<parallel>], iteration_bounds = array<i64: 2, 1>, scalar_prefetch = 0 : i64, scratch_operands = 0 : i64, tpu.core_type = #tpu.core_type<tc>, window_params = [{transform_indices = @transform_0, window_bounds = array<i64: 1, 128, 768>}, {pipeline_mode = #tpu.pipeline_mode<synchronous>, transform_indices = @transform_1, window_bounds = array<i64: 256, 768>}, {pipeline_mode = #tpu.pipeline_mode<synchronous>, transform_indices = @transform_2, window_bounds = array<i64: 256, 1>}, {transform_indices = @transform_3, window_bounds = array<i64: 1, 256, 128>}]} {
    %c0 = arith.constant 0 : index
    %c0_0 = arith.constant 0 : index
    %c0_1 = arith.constant 0 : index
    %0 = vector.load %arg2[%c0, %c0_0, %c0_1] : memref<1x128x768xbf16, #tpu.memory_space<vmem>>, vector<1x128x768xbf16>
    %1 = vector.shape_cast %0 : vector<1x128x768xbf16> to vector<128x768xbf16>
    %c0_2 = arith.constant 0 : index
    %c0_3 = arith.constant 0 : index
    %2 = vector.load %arg3[%c0_2, %c0_3] : memref<256x768xbf16, #tpu.memory_space<vmem>>, vector<256x768xbf16>
    %cst = arith.constant dense<0.000000e+00> : vector<256x128xf32>
    %3 = tpu.matmul %2, %1, %cst {dimension_numbers = #tpu.dot_dimension_numbers<[1], [1], [0], [0], [0, 0, 1, 0], [], []>} : vector<256x768xbf16>, vector<128x768xbf16>, vector<256x128xf32> -> vector<256x128xf32>
    %c0_4 = arith.constant 0 : index
    %c0_5 = arith.constant 0 : index
    %4 = vector.load %arg4[%c0_4, %c0_5] : memref<256x1xf32, #tpu.memory_space<vmem>>, vector<256x1xf32>
    %5 = vector.broadcast %4 : vector<256x1xf32> to vector<256x128xf32>
    %6 = arith.addf %3, %5 : vector<256x128xf32>
    %7 = vector.shape_cast %6 : vector<256x128xf32> to vector<1x256x128xf32>
    %c0_6 = arith.constant 0 : index
    %c0_7 = arith.constant 0 : index
    %c0_8 = arith.constant 0 : index
    %8 = vector.load %arg5[%c0_6, %c0_7, %c0_8] : memref<1x256x128xf32, #tpu.memory_space<vmem>>, vector<1x256x128xf32>
    tpu.vector_store %arg5[%c0_6, %c0_7, %c0_8], %7 {strides = array<i32>} : memref<1x256x128xf32, #tpu.memory_space<vmem>>, vector<1x256x128xf32>,
    return
  }
  func.func @transform_0(%arg0: i32, %arg1: i32) -> (i32, i32, i32) {
    %c0_i32 = arith.constant 0 : i32
    %c0_i32_0 = arith.constant 0 : i32
    return %arg0, %arg1, %c0_i32 : i32, i32, i32
  }
  func.func @transform_1(%arg0: i32, %arg1: i32) -> (i32, i32) {
    %c0_i32 = arith.constant 0 : i32
    %c0_i32_0 = arith.constant 0 : i32
    %c0_i32_1 = arith.constant 0 : i32
    return %c0_i32, %c0_i32_0 : i32, i32
  }
  func.func @transform_2(%arg0: i32, %arg1: i32) -> (i32, i32) {
    %c0_i32 = arith.constant 0 : i32
    %c0_i32_0 = arith.constant 0 : i32
    %c0_i32_1 = arith.constant 0 : i32
    return %c0_i32, %c0_i32_0 : i32, i32
  }
  func.func @transform_3(%arg0: i32, %arg1: i32) -> (i32, i32, i32) {
    %c0_i32 = arith.constant 0 : i32
    %c0_i32_0 = arith.constant 0 : i32
    return %arg0, %c0_i32, %arg1 : i32, i32, i32
  }
}

</mosaic_0001>

<bundles_post_ra>
// kernel: tpu_custom_call.1
= control target key start
LH: loop header
LB: loop body
LE: loop exit
PB: predicated region body
PF: predicated region fallthrough
CT: control target
= control target key end

     0   :  { %8 = vsyncpa [#allocation3], 0  ;;  %s3172_s0 = inlined_call_operand.hbm [shape: bf16[2,128,768], index: 0, kind: input, shape index: {}]   ;;  %s3173_s1 = inlined_call_operand.hbm [shape: bf16[256,768], index: 1, kind: input, shape index: {}]   ;;  %s3174_s2 = inlined_call_operand.vmem [shape: f32[256,1], index: 2, kind: input, shape index: {}]   ;;  %s3175_s3 = inlined_call_operand.hbm [shape: f32[2,256,128], index: 3, kind: output, shape index: {}]  }
   0x1   :  { %10 = vsyncpa [#allocation3 + $0x1], 0 }
   0x2   :  { %11 = vsyncpa [#allocation6], 0 }
   0x3   :  { %12 = vsyncpa [#allocation4], 0 }
   0x4   :  { %14 = vsyncpa [#allocation4 + $0x1], 0  ;;  %s2683_s12 = smov 0   ;;  %s2685_s13 = smov 0  }
   0x5   :  { %s2687_s14 = smov 0   ;;  %s2689_s15 = smov 0  }
   0x6   :  { %s2691_s16 = smov 0   ;;  %s2693_s17 = smov 0  }
   0x7 LB: > { %s1907_s18 = sadd.s32 4294967295, %s2653_s17   ;;  %s1908_s19 = sadd.s32 4294967294, %s2653_s17   ;;  %s2653_s17 = sphi %s2693_s17, %s20_s17   ;;  %s2649_s16 = sphi %s2691_s16, %s3198_s16   ;;  %s2645_s15 = sphi %s2689_s15, %s3197_s15   ;;  %s2641_s14 = sphi %s2687_s14, %s3196_s14   ;;  %s2637_s13 = sphi %s2685_s13, %s3195_s13   ;;  %s2633_s12 = sphi %s2683_s12, %s3194_s12  }
   0x8   : > { %p54_p0 = scmp.ne.s32.totalorder %s2637_s13, %s2633_s12  ;;  %p2717_p1 = scmp.eq.s32.totalorder %s1907_s18, 0 }
   0x9   : > { %p2721_p2 = scmp.eq.s32.totalorder %s1907_s18, 1  ;;  %p128_p3 = scmp.eq.s32.totalorder %s1908_s19, 1 }
   0xa   : > { %s3180_s20 = scalar_select %p2717_p1, 1, 0 }
   0xb   : > { %s3181_s21 = scalar_select %p2721_p2, 1, 0 }
   0xc   : > { %p2727_p4 = por %p2717_p1, %p54_p0  ;;  %p1909_p5 = scmp.ge.s32.totalorder %s2653_s17, 1 }
   0xd   : > { %p2732_p6 = por %p128_p3, %p54_p0  ;;  %p135_p7 = scmp.lt.s32.totalorder %s2653_s17, 3 }
   0xe   : > { %s3182_s22 = scalar_select %p2727_p4, 1, 0 }
   0xf   : > { %s3183_s23 = scalar_select %p2732_p6, 1, 0 }
  0x10   : > { %p2737_p8 = pnand %p1909_p5, %p135_p7  ;;  %s2655_s25 = smov [#allocation5]  }
  0x11   : > { %s147_s26 = sshll.u32 %s2655_s25, 4  ;;  %s32_s28 = sadd.s32 1, %s2649_s16  ;;  %s148_s26 = int_to_ptr.vmem [resolvable:$true] %s147_s26 }
  0x12   : > { %s3184_s24 = scalar_select %p2737_p8, 1, 0 }
  0x13   : > { %p2221_p9 = pneg %p2737_p8  ;;  %s2509_s4 = scalar_lea.hbm %s3173_s1, 12288 }
  0x14   : > { %p2510_p12 = scmp.ne.s32.totalorder %s3173_s1, %s2509_s4  ;;  %p2516_p5 = scmp.lt.u32.totalorder %s2509_s4, %s3173_s1 }
  0x15   : > { %p2746_p11 = pnand %p2221_p9, %p2717_p1 }
  0x17   : > { %p2511_p13 = pneg %p2746_p11 }
  0x19   : > { %p2512_p0 = pnand %p2511_p13, %p2510_p12 }
  0x1b   : > { %p2513_p3 = pneg %p2512_p0 }
  0x1d   : > { %p2518_p7 = pnand %p2516_p5, %p2513_p3 }
  0x1f   : > { %2521 = shalt.err (!%p2518_p7)
}
  0x20   : > { %s2522_s9 = scalar_lea.vmem %s148_s26, 12288  ;;  %p2530_p1 = scmp.lt.s32.totalorder %s148_s26, %s148_s26 }
  0x21   : > { %p2523_p9 = scmp.ne.s32.totalorder %s148_s26, %s2522_s9  ;;  %p2531_p4 = scmp.lt.s32.totalorder %s2522_s9, %s2522_s9 }
  0x23   : > { %p2525_p10 = pnand %p2523_p9, %p2511_p13  ;;  %p2532_p8 = por %p2531_p4, %p2530_p1 }
  0x25   : > { %p2526_p6 = pneg %p2525_p10 }
  0x27   : > { %p2533_p2 = pnand %p2532_p8, %p2526_p6 }
  0x29   : > { %2536 = shalt.err (!%p2533_p2)
}
  0x2a   : > { %s2656_s10 = smov 384   ;;  %s2657_s11 = smov 24  }
  0x2b   : > { %2224 = dma.hbm_to_vmem [thread:$0]  (!%p2746_p11), %s3173_s1, 12288, %s148_s26, [#allocation6], %s2656_s10, %s2656_s10, %s2657_s11  }
  0x2c   : > { %p34_p1 = scmp.ge.s32.totalorder %s32_s28, 2  ;;  %s41_s25 = sadd.s32 1, %s2641_s14 }
  0x2d   : > { %p48_p2 = scmp.ne.s32.totalorder %s2641_s14, %s2637_s13  ;;  %p49_p4 = scmp.eq.s32.totalorder %s2653_s17, 0 }
  0x2e   : > { %s3200_s28 = smov (%p34_p1, %s32_s28), 0  ;;  %p3186_p8 = scmp.ne.s32.totalorder %s3181_s21, 0 }
  0x2f   : > { %p50_p6 = por %p49_p4, %p48_p2  ;;  %s36_s27 = ssub.s32 %s2649_s16, %s3200_s28 }
  0x30   : > { %p2778_p10 = por %p3186_p8, %p48_p2  ;;  %p2234_p12 = scmp.lt.s32.totalorder %s2653_s17, 2 }
  0x31   : > { %p39_p13 = scmp.eq.s32.totalorder %s36_s27, 0  ;;  %s164_s30 = sand.u32 1, %s2641_s14  }
  0x32   : > { %s2210_s4 = smul.u32 384, %s164_s30  ;;  %p2790_p11 = pnand %p2234_p12, %p50_p6 }
  0x33   : > { %s2787_s5 = scalar_select %p39_p13, %s2641_s14, %s41_s25  }
  0x34   : > { %s2211_s26 = smul.u32 6144, %s2649_s16  ;;  %s168_s6 = scalar_lea.vmem [#allocation2], %s2210_s4 }
  0x35   : > { %s178_s7 = sshll.u32 %s168_s6, 4  ;;  %s2801_s19 = scalar_lea.sflag [#allocation3], %s164_s30  ;;  %s2799_s7 = int_to_ptr.vmem [resolvable:$true] %s178_s7 }
  0x36   : > { %s2797_s18 = scalar_lea.hbm %s3172_s0, %s2211_s26  ;;  %p2539_p3 = pneg %p2790_p11 }
  0x37   : > { %s2537_s25 = scalar_lea.hbm %s2797_s18, 6144  ;;  %s2542_s26 = scalar_lea.hbm %s3172_s0, 12288 }
  0x38   : > { %p2538_p0 = scmp.ne.s32.totalorder %s2797_s18, %s2537_s25  ;;  %p2543_p9 = scmp.lt.u32.totalorder %s2797_s18, %s3172_s0 }
  0x39   : > { %p2544_p1 = scmp.lt.u32.totalorder %s2542_s26, %s2537_s25  ;;  %p2546_p4 = scmp.lt.u32.totalorder %s2537_s25, %s2797_s18 }
  0x3a   : > { %p2540_p5 = pnand %p2539_p3, %p2538_p0 }
  0x3b   : > { %p2545_p2 = por %p2544_p1, %p2543_p9 }
  0x3c   : > { %p2541_p7 = pneg %p2540_p5 }
  0x3d   : > { %p2547_p6 = por %p2546_p4, %p2545_p2 }
  0x3f   : > { %p2548_p8 = pnand %p2547_p6, %p2541_p7 }
  0x41   : > { %2551 = shalt.err (!%p2548_p8)
}
  0x42   : > { %s2552_s30 = scalar_lea.vmem %s2799_s7, 6144  ;;  %s2658_s21 = smov [#allocation2]  }
  0x43   : > { %p2553_p12 = scmp.ne.s32.totalorder %s2799_s7, %s2552_s30  ;;  %s2557_s27 = sshll.u32 %s2658_s21, 4  ;;  %s2558_s27 = int_to_ptr.vmem [resolvable:$false] %s2557_s27 }
  0x44   : > { %s2559_s4 = scalar_lea.vmem %s2558_s27, 12288  ;;  %p2560_p5 = scmp.lt.s32.totalorder %s2799_s7, %s2558_s27 }
  0x45   : > { %p2555_p13 = pnand %p2553_p12, %p2539_p3  ;;  %p2561_p9 = scmp.lt.s32.totalorder %s2559_s4, %s2552_s30 }
  0x47   : > { %p2556_p0 = pneg %p2555_p13  ;;  %p2562_p1 = por %p2561_p9, %p2560_p5 }
  0x49   : > { %p2563_p2 = pnand %p2562_p1, %p2556_p0 }
  0x4b   : > { %2566 = shalt.err (!%p2563_p2)
}
  0x4c   : > { %2228 = dma.hbm_to_vmem [thread:$0]  (!%p2790_p11), %s2797_s18, 6144, %s2799_s7, %s2801_s19, %s2656_s10, %s2656_s10, %s2657_s11  }
  0x4d   : > { %p3189_p3 = scmp.ne.s32.totalorder %s3184_s24, 0 }
  0x4e   : > { %s2835_s25 = sand.u32 (!%p3189_p3), 1, %s2637_s13   ;;  %p3190_p7 = scmp.ne.s32.totalorder (!%p3189_p3), %s3182_s22, 0 }
  0x4f   : > { %190 = sbr.rel (%p3189_p3) target bundleno = 572 (0x23c), region = 32  ;;  %s193_s6 = scalar_lea.sflag (!%p3189_p3), [#allocation3], %s2835_s25 }
  0x50   : > { %s2212_s26 = smul.u32 (!%p3189_p3), 384, %s2835_s25 }
  0x52   : > { %s2839_s9 = scalar_lea.vmem (!%p3189_p3), [#allocation2], %s2212_s26 }
  0x56   : > { %2620 = dma.done.wait (%p3190_p7), %s193_s6, 6144  }
  0x57   : > { %2622 = vsyncadd (%p3190_p7), %s193_s6, 4294961152  ;;  %p3191_p11 = scmp.ne.s32.totalorder %s3180_s20, 0 }
  0x59   : > { %2624 = dma.done.wait (%p3191_p11), [#allocation6], 12288  }
  0x5a   : > { %2626 = vsyncadd (%p3191_p11), [#allocation6], 4294955008  ;;  %v2293_v0 = vld [vmem:[%s2839_s9 + $0x4] ss:$24 sps:$4 sm:$0xff]   ;;  %v2297_v2 = vld [vmem:[%s2839_s9] ss:$24 sps:$4 sm:$0xff]  }
  0x5b   : > { %v2851_v1 = vld [vmem:[%s2839_s9 + $0xc] ss:$24 sps:$4 sm:$0xff]   ;;  %1281 = vmatprep.subr.bf16.mxu1 %v2293_v0  ;;  %v2855_v3 = vld [vmem:[%s2839_s9 + $0x8] ss:$24 sps:$4 sm:$0xff]   ;;  %v2861_v5 = vld [vmem:[%s2839_s9 + $0x3c] ss:$24 sps:$4 sm:$0xff]  }
  0x5c   : > { %1442 = vmatprep.subr.bf16.mxu0 %v2851_v1  ;;  %v2299_v4 = vld [vmem:[%s2839_s9 + $0x34] ss:$24 sps:$4 sm:$0xff]   ;;  %1282 = vmatpush1.bf16.xpose.msra.mxu1 %v2297_v2  ;;  %v2303_v6 = vld [vmem:[%s2839_s9 + $0x30] ss:$24 sps:$4 sm:$0xff]   ;;  %v2305_v8 = vld [vmem:[%s2839_s9 + $0x64] ss:$24 sps:$4 sm:$0xff]  }
  0x5d   : > { %1443 = vmatpush1.bf16.xpose.msra.mxu0 %v2855_v3  ;;  %1283 = vmatprep.subr.bf16.mxu1 %v2299_v4  ;;  %v2866_v7 = vld [vmem:[%s2839_s9 + $0x38] ss:$24 sps:$4 sm:$0xff]   ;;  %v2870_v9 = vld [vmem:[%s2839_s9 + $0x6c] ss:$24 sps:$4 sm:$0xff]   ;;  %v2876_v11 = vld [vmem:[%s2839_s9 + $0x68] ss:$24 sps:$4 sm:$0xff]  }
  0x5e   : > { %1444 = vmatprep.subr.bf16.mxu0 %v2861_v5  ;;  %v2309_v10 = vld [vmem:[%s2839_s9 + $0x60] ss:$24 sps:$4 sm:$0xff]   ;;  %v2311_v12 = vld [vmem:[%s2839_s9 + $0x94] ss:$24 sps:$4 sm:$0xff]   ;;  %v2315_v14 = vld [vmem:[%s2839_s9 + $0x90] ss:$24 sps:$4 sm:$0xff]  }
  0x5f   : > { %v2880_v13 = vld [vmem:[%s2839_s9 + $0x9c] ss:$24 sps:$4 sm:$0xff]   ;;  %v2659_v16 = vmov 0   ;;  %v2886_v17 = vld [vmem:[%s2839_s9 + $0x98] ss:$24 sps:$4 sm:$0xff]   ;;  %v369_v37 = vld [vmem:[%s3174_s2] sm:$0xff] }
  0x60   : > { %v2343_v15 = vld [vmem:[#allocation5 + $0x4] ss:$24 sps:$4 sm:$0xff]   ;;  %2291 = vset.pattern.permute.xlu0 %v2659_v16  ;;  %2292 = vset.pattern.permute.xlu1 %v2659_v16  ;;  %v2321_v21 = vld [vmem:[%s2839_s9 + $0xc0] ss:$24 sps:$4 sm:$0xff]   ;;  %v2323_v23 = vld [vmem:[%s2839_s9 + $0xf4] ss:$24 sps:$4 sm:$0xff]  }
  0x61   : > { %v2346_v18 = vld [vmem:[#allocation5 + $0xc] ss:$24 sps:$4 sm:$0xff]   ;;  %1313 = vmatprep.mubr.bf16.mxu1 %v2343_v15  ;;  %v2896_v22 = vld [vmem:[%s2839_s9 + $0xc8] ss:$24 sps:$4 sm:$0xff]   ;;  %v2900_v24 = vld [vmem:[%s2839_s9 + $0xfc] ss:$24 sps:$4 sm:$0xff]   ;;  %403 = vperm.xlu0 %2291, %v369_v37  }
  0x62   : > { %v2317_v19 = vld [vmem:[%s2839_s9 + $0xc4] ss:$24 sps:$4 sm:$0xff]   ;;  %1474 = vmatprep.mubr.bf16.mxu0 %v2346_v18  ;;  %v2327_v25 = vld [vmem:[%s2839_s9 + $0xf0] ss:$24 sps:$4 sm:$0xff]   ;;  %v2333_v29 = vld [vmem:[%s2839_s9 + $0x120] ss:$24 sps:$4 sm:$0xff]  }
  0x63   : > { %v2890_v20 = vld [vmem:[%s2839_s9 + $0xcc] ss:$24 sps:$4 sm:$0xff]   ;;  %v2906_v26 = vld [vmem:[%s2839_s9 + $0xf8] ss:$24 sps:$4 sm:$0xff]   ;;  %v2916_v30 = vld [vmem:[%s2839_s9 + $0x128] ss:$24 sps:$4 sm:$0xff]  }
  0x64   : > { %1284 = vmatpush1.bf16.xpose.msra.mxu1 %v2303_v6  ;;  %v2329_v27 = vld [vmem:[%s2839_s9 + $0x124] ss:$24 sps:$4 sm:$0xff]   ;;  %v2335_v31 = vld [vmem:[%s2839_s9 + $0x154] ss:$24 sps:$4 sm:$0xff]   ;;  %v2339_v33 = vld [vmem:[%s2839_s9 + $0x150] ss:$24 sps:$4 sm:$0xff]  }
  0x65   : > { %1445 = vmatpush1.bf16.xpose.msra.mxu0 %v2866_v7  ;;  %1285 = vmatprep.subr.bf16.mxu1 %v2305_v8  ;;  %v2910_v28 = vld [vmem:[%s2839_s9 + $0x12c] ss:$24 sps:$4 sm:$0xff]   ;;  %v2920_v32 = vld [vmem:[%s2839_s9 + $0x15c] ss:$24 sps:$4 sm:$0xff]   ;;  %v2926_v34 = vld [vmem:[%s2839_s9 + $0x158] ss:$24 sps:$4 sm:$0xff]  }
  0x66   : > { %1446 = vmatprep.subr.bf16.mxu0 %v2870_v9  ;;  %v2349_v35 = vld [vmem:[%s2839_s9 + $0x14] ss:$24 sps:$4 sm:$0xff]   ;;  %v2341_v36 = vld [vmem:[#allocation5] ss:$24 sps:$4 sm:$0xff]   ;;  %v2347_v40 = vld [vmem:[%s2839_s9 + $0x10] ss:$24 sps:$4 sm:$0xff]  }
  0x67   : > { %v2344_v38 = vld [vmem:[#allocation5 + $0x8] ss:$24 sps:$4 sm:$0xff]   ;;  %v2350_v41 = vld [vmem:[#allocation5 + $0x34] ss:$24 sps:$4 sm:$0xff]   ;;  %v2358_v44 = vld [vmem:[%s2839_s9 + $0x44] ss:$24 sps:$4 sm:$0xff]  }
  0x68   : > { %v370_v39 = vld [vmem:[%s3174_s2 + $0x8] sm:$0xff]  ;;  %v371_v42 = vld [vmem:[%s3174_s2 + $0x10] sm:$0xff]  ;;  %v372_v45 = vld [vmem:[%s3174_s2 + $0x18] sm:$0xff]  ;;  %s1915_s24 = sshll.u32 %s2835_s25, 8  ;;  %s2065_s11 = sshll.u32 %s2645_s15, 12 }
  0x69   : > { %v2352_v43 = vld [vmem:[#allocation5 + $0x3c] ss:$24 sps:$4 sm:$0xff]   ;;  %413 = vperm.xlu1 %2292, %v371_v42   ;;  %408 = vperm.xlu0 %2291, %v370_v39   ;;  %v373_v46 = vld [vmem:[%s3174_s2 + $0x20] sm:$0xff]  ;;  %v2354_v47 = vld [vmem:[#allocation5 + $0x30] ss:$24 sps:$4 sm:$0xff]   ;;  %s3074_s10 = scalar_lea.vmem [#allocation7], %s1915_s24  ;;  %s3119_s19 = scalar_lea.hbm %s3175_s3, %s2065_s11 }
  0x6a   : > { %v2355_v48 = vld [vmem:[#allocation5 + $0x38] ss:$24 sps:$4 sm:$0xff]   ;;  %v2359_v50 = vld [vmem:[#allocation5 + $0x64] ss:$24 sps:$4 sm:$0xff]   ;;  %v2367_v52 = vld [vmem:[%s2839_s9 + $0x74] ss:$24 sps:$4 sm:$0xff]  }
  0x6b   : > { %v2356_v49 = vld [vmem:[%s2839_s9 + $0x40] ss:$24 sps:$4 sm:$0xff]   ;;  %v2361_v51 = vld [vmem:[#allocation5 + $0x6c] ss:$24 sps:$4 sm:$0xff]   ;;  %v375_v54 = vld [vmem:[%s3174_s2 + $0x30] sm:$0xff]  ;;  %s1811_s7 = sshll.u32 %s3074_s10, 4  ;;  %s3121_s7 = int_to_ptr.vmem [resolvable:$true] %s1811_s7 }
  0x6c   : > { %1286 = vmatpush1.bf16.xpose.msra.mxu1 %v2309_v10  ;;  %v374_v53 = vld [vmem:[%s3174_s2 + $0x28] sm:$0xff]  ;;  %v2363_v55 = vld [vmem:[#allocation5 + $0x60] ss:$24 sps:$4 sm:$0xff]   ;;  %v2370_v60 = vld [vmem:[#allocation5 + $0x9c] ss:$24 sps:$4 sm:$0xff]   ;;  %s1797_s15 = scalar_lea.sflag [#allocation4], %s2835_s25 }
  0x6d   : > { %1447 = vmatpush1.bf16.xpose.msra.mxu0 %v2876_v11  ;;  %1287 = vmatprep.subr.bf16.mxu1 %v2311_v12  ;;  %v2364_v56 = vld [vmem:[#allocation5 + $0x68] ss:$24 sps:$4 sm:$0xff]   ;;  %v376_v58 = vld [vmem:[%s3174_s2 + $0x38] sm:$0xff]  ;;  %v2368_v59 = vld [vmem:[#allocation5 + $0x94] ss:$24 sps:$4 sm:$0xff]   ;;  %s2567_s30 = scalar_lea.vmem %s3121_s7, 4096 }
  0x6e   : > { %1448 = vmatprep.subr.bf16.mxu0 %v2880_v13  ;;  %418 = vperm.xlu1 %2292, %v372_v45   ;;  %v2365_v57 = vld [vmem:[%s2839_s9 + $0x70] ss:$24 sps:$4 sm:$0xff]   ;;  %v2376_v61 = vld [vmem:[%s2839_s9 + $0xa4] ss:$24 sps:$4 sm:$0xff]   ;;  %v2374_v2 = vld [vmem:[%s2839_s9 + $0xa0] ss:$24 sps:$4 sm:$0xff]   ;;  %p2568_p4 = scmp.ne.s32.totalorder %s3121_s7, %s2567_s30 }
  0x6f   : > { %423 = vperm.xlu0 %2291, %v373_v46   ;;  %v377_v62 = vld [vmem:[%s3174_s2 + $0x40] sm:$0xff]  ;;  %v378_v63 = vld [vmem:[%s3174_s2 + $0x48] sm:$0xff]  ;;  %v379_v4 = vld [vmem:[%s3174_s2 + $0x50] sm:$0xff] }
  0x70   : > { %v2372_v0 = vld [vmem:[#allocation5 + $0x90] ss:$24 sps:$4 sm:$0xff]   ;;  %v2385_v6 = vld [vmem:[%s2839_s9 + $0xd4] ss:$24 sps:$4 sm:$0xff]   ;;  %v381_v8 = vld [vmem:[%s3174_s2 + $0x60] sm:$0xff]  ;;  %p2569_p6 = pnand %p2568_p4, %p2778_p10 }
  0x71   : > { %v2382_v10 = vld [vmem:[#allocation5 + $0xc8] ss:$24 sps:$4 sm:$0xff]   ;;  %v2394_v15 = vld [vmem:[%s2839_s9 + $0x104] ss:$24 sps:$4 sm:$0xff]   ;;  %v383_v16 = vld [vmem:[%s3174_s2 + $0x70] sm:$0xff] }
  0x72   : > { %428 = vperm.xlu1 %2292, %v374_v53   ;;  %v2383_v12 = vld [vmem:[%s2839_s9 + $0xd0] ss:$24 sps:$4 sm:$0xff]   ;;  %v2410_v37 = vld [vmem:[%s2839_s9 + $0x160] ss:$24 sps:$4 sm:$0xff]   ;;  %v2417_v39 = vld [vmem:[#allocation5 + $0x14] ss:$24 sps:$4 sm:$0xff]   ;;  %p2570_p8 = pneg %p2569_p6 }
  0x73   : > { %433 = vperm.xlu0 %2291, %v375_v54   ;;  %v2390_v18 = vld [vmem:[#allocation5 + $0xf0] ss:$24 sps:$4 sm:$0xff]   ;;  %v2418_v42 = vld [vmem:[#allocation5 + $0x180] ss:$24 sps:$4 sm:$0xff]   ;;  %v2421_v45 = vld [vmem:[#allocation5 + $0x44] ss:$24 sps:$4 sm:$0xff]  }
  0x74   : > { %1288 = vmatpush1.bf16.xpose.msra.mxu1 %v2315_v14  ;;  %v2388_v14 = vld [vmem:[#allocation5 + $0xfc] ss:$24 sps:$4 sm:$0xff]  }
  0x75   : > { %1449 = vmatpush1.bf16.xpose.msra.mxu0 %v2886_v17  ;;  %1289 = vmatprep.subr.bf16.mxu1 %v2317_v19  ;;  %v2391_v19 = vld [vmem:[#allocation5 + $0xf8] ss:$24 sps:$4 sm:$0xff]  }
  0x76   : > { %1450 = vmatprep.subr.bf16.mxu0 %v2890_v20  ;;  %438 = vperm.xlu1 %2292, %v376_v58   ;;  %v392_v46 = vld [vmem:[%s3174_s2 + $0xb8] sm:$0xff]  ;;  %v395_v54 = vld [vmem:[%s3174_s2 + $0xd0] sm:$0xff]  ;;  %v397_v58 = vld [vmem:[%s3174_s2 + $0xe0] sm:$0xff] }
  0x77   : > { %443 = vperm.xlu0 %2291, %v377_v62   ;;  %v396_v53 = vld [vmem:[%s3174_s2 + $0xd8] sm:$0xff]  ;;  %v399_v62 = vld [vmem:[%s3174_s2 + $0xf0] sm:$0xff] }
  0x7a   : > { %448 = vperm.xlu1 %2292, %v378_v63   ;;  %v2435_v63 = vld [vmem:[#allocation5 + $0x210] ss:$24 sps:$4 sm:$0xff]  }
  0x7b   : > { %453 = vperm.xlu0 %2291, %v379_v4   ;;  %v2442_v4 = vld [vmem:[#allocation5 + $0xd0] ss:$24 sps:$4 sm:$0xff]  }
  0x7c   : > { %1290 = vmatpush1.bf16.xpose.msra.mxu1 %v2321_v21  ;;  %v2395_v21 = vld [vmem:[#allocation5 + $0x124] ss:$24 sps:$4 sm:$0xff]  }
  0x7d   : > { %1451 = vmatpush1.bf16.xpose.msra.mxu0 %v2896_v22  ;;  %1291 = vmatprep.subr.bf16.mxu1 %v2323_v23  ;;  %v2397_v23 = vld [vmem:[#allocation5 + $0x12c] ss:$24 sps:$4 sm:$0xff]  }
  0x7e   : > { %1452 = vmatprep.subr.bf16.mxu0 %v2900_v24 }
  0x7f   : > { %463 = vperm.xlu0 %2291, %v381_v8   ;;  %v2448_v8 = vld [vmem:[#allocation5 + $0x100] ss:$24 sps:$4 sm:$0xff]  }
  0x83   : > { %473 = vperm.xlu0 %2291, %v383_v16   ;;  %v2460_v16 = vld [vmem:[#allocation5 + $0x160] ss:$24 sps:$4 sm:$0xff]  }
  0x84   : > { %1292 = vmatpush1.bf16.xpose.msra.mxu1 %v2327_v25  ;;  %v2403_v25 = vld [vmem:[%s2839_s9 + $0x134] ss:$24 sps:$4 sm:$0xff]  }
  0x85   : > { %1453 = vmatpush1.bf16.xpose.msra.mxu0 %v2906_v26  ;;  %1293 = vmatprep.subr.bf16.mxu1 %v2329_v27  ;;  %v2400_v27 = vld [vmem:[#allocation5 + $0x128] ss:$24 sps:$4 sm:$0xff]  }
  0x86   : > { %1454 = vmatprep.subr.bf16.mxu0 %v2910_v28 }
  0x8c   : > { %1294 = vmatpush1.bf16.xpose.msra.mxu1 %v2333_v29  ;;  %v2404_v29 = vld [vmem:[#allocation5 + $0x154] ss:$24 sps:$4 sm:$0xff]  }
  0x8d   : > { %1455 = vmatpush1.bf16.xpose.msra.mxu0 %v2916_v30  ;;  %1295 = vmatprep.subr.bf16.mxu1 %v2335_v31  ;;  %v2406_v31 = vld [vmem:[#allocation5 + $0x15c] ss:$24 sps:$4 sm:$0xff]  }
  0x8e   : > { %1456 = vmatprep.subr.bf16.mxu0 %v2920_v32 }
  0x94   : > { %1296 = vmatpush1.bf16.xpose.msra.mxu1 %v2339_v33  ;;  %v2412_v33 = vld [vmem:[%s2839_s9 + $0x164] ss:$24 sps:$4 sm:$0xff]  }
  0x95   : > { %1457 = vmatpush1.bf16.xpose.msra.mxu0 %v2926_v34  ;;  %2066 = vmatprep.subr.bf16.mxu1 %v2851_v1  ;;  %v2373_v1 = vld [vmem:[#allocation5 + $0x98] ss:$24 sps:$4 sm:$0xff]  }
  0x96   : > { %1603 = vmatprep.subr.bf16.mxu0 %v2349_v35  ;;  %v386_v35 = vld [vmem:[%s3174_s2 + $0x88] sm:$0xff] }
  0x9b   : > { %1314 = vmatmul.mubr.bf16.vlgmr.msra.gmra.mrb[0].mxu1 %v2341_v36  ;;  %v2409_v36 = vld [vmem:[#allocation5 + $0x158] ss:$24 sps:$4 sm:$0xff]  }
  0x9c   : > { %1475 = vmatmul.mubr.bf16.vlgmr.msra.gmra.mrb[0].mxu0 %v2344_v38  ;;  %2074 = vmatpush1.bf16.xpose.msra.mxu1 %v2855_v3  ;;  %v2377_v3 = vld [vmem:[#allocation5 + $0xc4] ss:$24 sps:$4 sm:$0xff]  }
  0x9d   : > { %1604 = vmatpush1.bf16.xpose.msra.mxu0 %v2347_v40  ;;  %1321 = vmatprep.mubr.bf16.mxu1 %v2350_v41  ;;  %v2413_v38 = vld [vmem:[#allocation5 + $0x184] ss:$24 sps:$4 sm:$0xff]   ;;  %v387_v41 = vld [vmem:[%s3174_s2 + $0x90] sm:$0xff] }
  0x9e   : > { %1482 = vmatprep.mubr.bf16.mxu0 %v2352_v43  ;;  %1605 = vmatprep.subr.bf16.mxu0 %v2358_v44  ;;  %v388_v40 = vld [vmem:[%s3174_s2 + $0x98] sm:$0xff]  ;;  %v389_v43 = vld [vmem:[%s3174_s2 + $0xa0] sm:$0xff]  ;;  %v2419_v44 = vld [vmem:[#allocation5 + $0x1b4] ss:$24 sps:$4 sm:$0xff]  }
  0x9f   : > { %2067 = vmatprep.subr.bf16.mxu1 %v2861_v5  ;;  %v2379_v5 = vld [vmem:[#allocation5 + $0xcc] ss:$24 sps:$4 sm:$0xff]  }
  0xa3   : > { %1322 = vmatmul.mubr.bf16.gmra.mrb[4].mxu1 %v2354_v47  ;;  %v394_v47 = vld [vmem:[%s3174_s2 + $0xc8] sm:$0xff] }
  0xa4   : > { %1483 = vmatmul.mubr.bf16.gmra.mrb[4].mxu0 %v2355_v48  ;;  %1329 = vmatprep.mubr.bf16.mxu1 %v2359_v50  ;;  %v2423_v48 = vld [vmem:[#allocation5 + $0x1b0] ss:$24 sps:$4 sm:$0xff]   ;;  %v393_v50 = vld [vmem:[%s3174_s2 + $0xc0] sm:$0xff] }
  0xa5   : > { %1606 = vmatpush1.bf16.xpose.msra.mxu0 %v2356_v49  ;;  %1490 = vmatprep.mubr.bf16.mxu0 %v2361_v51  ;;  %v2424_v49 = vld [vmem:[#allocation5 + $0x40] ss:$24 sps:$4 sm:$0xff]   ;;  %v2425_v51 = vld [vmem:[#allocation5 + $0x1e4] ss:$24 sps:$4 sm:$0xff]  }
  0xa6   : > { %1607 = vmatprep.subr.bf16.mxu0 %v2367_v52  ;;  %2075 = vmatpush1.bf16.xpose.msra.mxu1 %v2866_v7  ;;  %v380_v7 = vld [vmem:[%s3174_s2 + $0x58] sm:$0xff]  ;;  %v2427_v52 = vld [vmem:[#allocation5 + $0x74] ss:$24 sps:$4 sm:$0xff]  }
  0xa7   : > { %2068 = vmatprep.subr.bf16.mxu1 %v2870_v9  ;;  %v2381_v9 = vld [vmem:[#allocation5 + $0xc0] ss:$24 sps:$4 sm:$0xff]   ;;  %458 = vperm.xlu1 %2292, %v380_v7   ;;  %v2447_v7 = vld [vmem:[#allocation5 + $0x270] ss:$24 sps:$4 sm:$0xff]  }
  0xab   : > { %1330 = vmatmul.mubr.bf16.gmra.mrb[8].mxu1 %v2363_v55  ;;  %v398_v55 = vld [vmem:[%s3174_s2 + $0xe8] sm:$0xff] }
  0xac   : > { %1491 = vmatmul.mubr.bf16.gmra.mrb[8].mxu0 %v2364_v56  ;;  %1337 = vmatprep.mubr.bf16.mxu1 %v2368_v59  ;;  %v2429_v56 = vld [vmem:[#allocation5 + $0x1e0] ss:$24 sps:$4 sm:$0xff]   ;;  %v2431_v59 = vld [vmem:[#allocation5 + $0x214] ss:$24 sps:$4 sm:$0xff]  }
  0xad   : > { %1608 = vmatpush1.bf16.xpose.msra.mxu0 %v2365_v57  ;;  %1498 = vmatprep.mubr.bf16.mxu0 %v2370_v60  ;;  %v2430_v57 = vld [vmem:[#allocation5 + $0x70] ss:$24 sps:$4 sm:$0xff]   ;;  %v2433_v60 = vld [vmem:[#allocation5 + $0xa4] ss:$24 sps:$4 sm:$0xff]  }
  0xae   : > { %1609 = vmatprep.subr.bf16.mxu0 %v2376_v61  ;;  %2076 = vmatpush1.bf16.xpose.msra.mxu1 %v2876_v11  ;;  %v382_v11 = vld [vmem:[%s3174_s2 + $0x68] sm:$0xff]  ;;  %v400_v61 = vld [vmem:[%s3174_s2 + $0xf8] sm:$0xff] }
  0xaf   : > { %2069 = vmatprep.subr.bf16.mxu1 %v2880_v13  ;;  %v2386_v13 = vld [vmem:[#allocation5 + $0xf4] ss:$24 sps:$4 sm:$0xff]   ;;  %468 = vperm.xlu1 %2292, %v382_v11   ;;  %v2453_v11 = vld [vmem:[#allocation5 + $0x2a0] ss:$24 sps:$4 sm:$0xff]  }
  0xb3   : > { %1338 = vmatmul.mubr.bf16.gmra.mrb[12].mxu1 %v2372_v0  ;;  %v2436_v0 = vld [vmem:[#allocation5 + $0xa0] ss:$24 sps:$4 sm:$0xff]  }
  0xb4   : > { %1499 = vmatmul.mubr.bf16.gmra.mrb[12].mxu0 %v2373_v1  ;;  %1345 = vmatprep.mubr.bf16.mxu1 %v2377_v3  ;;  %v2437_v1 = vld [vmem:[#allocation5 + $0x244] ss:$24 sps:$4 sm:$0xff]   ;;  %v2441_v3 = vld [vmem:[#allocation5 + $0x240] ss:$24 sps:$4 sm:$0xff]  }
  0xb5   : > { %1610 = vmatpush1.bf16.xpose.msra.mxu0 %v2374_v2  ;;  %1506 = vmatprep.mubr.bf16.mxu0 %v2379_v5  ;;  %v2439_v2 = vld [vmem:[#allocation5 + $0xd4] ss:$24 sps:$4 sm:$0xff]  }
  0xb6   : > { %1611 = vmatprep.subr.bf16.mxu0 %v2385_v6  ;;  %2077 = vmatpush1.bf16.xpose.msra.mxu1 %v2886_v17  ;;  %v384_v17 = vld [vmem:[%s3174_s2 + $0x78] sm:$0xff]  ;;  %v2443_v5 = vld [vmem:[#allocation5 + $0x274] ss:$24 sps:$4 sm:$0xff]  }
  0xb7   : > { %2070 = vmatprep.subr.bf16.mxu1 %v2890_v20  ;;  %478 = vperm.xlu1 %2292, %v384_v17   ;;  %v2392_v20 = vld [vmem:[%s2839_s9 + $0x100] ss:$24 sps:$4 sm:$0xff]   ;;  %v2445_v6 = vld [vmem:[#allocation5 + $0x104] ss:$24 sps:$4 sm:$0xff]  }
  0xb8   : > { %v2463_v17 = vld [vmem:[#allocation5 + $0x18c] ss:$24 sps:$4 sm:$0xff]  }
  0xbb   : > { %1346 = vmatmul.mubr.bf16.gmra.mrb[16].mxu1 %v2381_v9  ;;  %488 = vperm.xlu1 %2292, %v386_v35   ;;  %v2449_v9 = vld [vmem:[#allocation5 + $0x2a4] ss:$24 sps:$4 sm:$0xff]  }
  0xbc   : > { %1507 = vmatmul.mubr.bf16.gmra.mrb[16].mxu0 %v2382_v10  ;;  %1353 = vmatprep.mubr.bf16.mxu1 %v2386_v13  ;;  %v2451_v10 = vld [vmem:[#allocation5 + $0x134] ss:$24 sps:$4 sm:$0xff]   ;;  %v2481_v35 = vld [vmem:[#allocation5 + $0x224] ss:$24 sps:$4 sm:$0xff]  }
  0xbd   : > { %1612 = vmatpush1.bf16.xpose.msra.mxu0 %v2383_v12  ;;  %1514 = vmatprep.mubr.bf16.mxu0 %v2388_v14  ;;  %v2454_v12 = vld [vmem:[#allocation5 + $0x130] ss:$24 sps:$4 sm:$0xff]   ;;  %v2455_v13 = vld [vmem:[#allocation5 + $0x2d4] ss:$24 sps:$4 sm:$0xff]   ;;  %v2457_v14 = vld [vmem:[#allocation5 + $0x164] ss:$24 sps:$4 sm:$0xff]  }
  0xbe   : > { %1613 = vmatprep.subr.bf16.mxu0 %v2394_v15  ;;  %2078 = vmatpush1.bf16.xpose.msra.mxu1 %v2896_v22  ;;  %v2399_v22 = vld [vmem:[#allocation5 + $0x120] ss:$24 sps:$4 sm:$0xff]   ;;  %v2459_v15 = vld [vmem:[#allocation5 + $0x2d0] ss:$24 sps:$4 sm:$0xff]  }
  0xbf   : > { %2071 = vmatprep.subr.bf16.mxu1 %v2900_v24  ;;  %v2401_v24 = vld [vmem:[%s2839_s9 + $0x130] ss:$24 sps:$4 sm:$0xff]   ;;  %498 = vperm.xlu1 %2292, %v388_v40   ;;  %v2491_v40 = vld [vmem:[#allocation5 + $0x27c] ss:$24 sps:$4 sm:$0xff]   ;;  %s2660_s9 = smov [#allocation7]  }
  0xc0   : > { %s2571_s21 = sshll.u32 %s2660_s9, 4  ;;  %s2572_s21 = int_to_ptr.vmem [resolvable:$false] %s2571_s21 }
  0xc1   : > { %s2573_s27 = scalar_lea.vmem %s2572_s21, 8192  ;;  %p2574_p12 = scmp.lt.s32.totalorder %s3121_s7, %s2572_s21 }
  0xc2   : > { %p2575_p13 = scmp.lt.s32.totalorder %s2573_s27, %s2567_s30 }
  0xc3   : > { %1354 = vmatmul.mubr.bf16.gmra.mrb[20].mxu1 %v2390_v18  ;;  %v2464_v18 = vld [vmem:[#allocation5 + $0x194] ss:$24 sps:$4 sm:$0xff]  }
  0xc4   : > { %1515 = vmatmul.mubr.bf16.gmra.mrb[20].mxu0 %v2391_v19  ;;  %1361 = vmatprep.mubr.bf16.mxu1 %v2395_v21  ;;  %v2461_v19 = vld [vmem:[#allocation5 + $0x188] ss:$24 sps:$4 sm:$0xff]   ;;  %v2467_v21 = vld [vmem:[#allocation5 + $0x1bc] ss:$24 sps:$4 sm:$0xff]   ;;  %p2576_p0 = por %p2575_p13, %p2574_p12 }
  0xc5   : > { %1614 = vmatpush1.bf16.xpose.msra.mxu0 %v2392_v20  ;;  %1522 = vmatprep.mubr.bf16.mxu0 %v2397_v23  ;;  %v2466_v20 = vld [vmem:[#allocation5 + $0x190] ss:$24 sps:$4 sm:$0xff]   ;;  %v2469_v23 = vld [vmem:[#allocation5 + $0x1c4] ss:$24 sps:$4 sm:$0xff]  }
  0xc6   : > { %1615 = vmatprep.subr.bf16.mxu0 %v2403_v25  ;;  %2079 = vmatpush1.bf16.xpose.msra.mxu1 %v2906_v26  ;;  %v385_v26 = vld [vmem:[%s3174_s2 + $0x80] sm:$0xff]  ;;  %v2471_v25 = vld [vmem:[#allocation5 + $0x1b8] ss:$24 sps:$4 sm:$0xff]   ;;  %p2577_p5 = pnand %p2576_p0, %p2570_p8 }
  0xc7   : > { %2072 = vmatprep.subr.bf16.mxu1 %v2910_v28  ;;  %v2408_v28 = vld [vmem:[#allocation5 + $0x150] ss:$24 sps:$4 sm:$0xff]   ;;  %483 = vperm.xlu0 %2291, %v385_v26  }
  0xc8   : > { %v2483_v26 = vld [vmem:[#allocation5 + $0x218] ss:$24 sps:$4 sm:$0xff]  }
  0xcb   : > { %1362 = vmatmul.mubr.bf16.gmra.mrb[24].mxu1 %v2399_v22  ;;  %493 = vperm.xlu0 %2291, %v387_v41   ;;  %v2472_v22 = vld [vmem:[#allocation5 + $0x1c0] ss:$24 sps:$4 sm:$0xff]   ;;  %v2493_v41 = vld [vmem:[#allocation5 + $0x284] ss:$24 sps:$4 sm:$0xff]  }
  0xcc   : > { %1523 = vmatmul.mubr.bf16.gmra.mrb[24].mxu0 %v2400_v27  ;;  %1369 = vmatprep.mubr.bf16.mxu1 %v2404_v29  ;;  %v2473_v27 = vld [vmem:[#allocation5 + $0x1ec] ss:$24 sps:$4 sm:$0xff]   ;;  %v2477_v29 = vld [vmem:[#allocation5 + $0x1e8] ss:$24 sps:$4 sm:$0xff]  }
  0xcd   : > { %1616 = vmatpush1.bf16.xpose.msra.mxu0 %v2401_v24  ;;  %1530 = vmatprep.mubr.bf16.mxu0 %v2406_v31  ;;  %v2475_v24 = vld [vmem:[#allocation5 + $0x1f4] ss:$24 sps:$4 sm:$0xff]   ;;  %v2478_v31 = vld [vmem:[#allocation5 + $0x1f0] ss:$24 sps:$4 sm:$0xff]  }
  0xce   : > { %1617 = vmatprep.subr.bf16.mxu0 %v2412_v33  ;;  %2080 = vmatpush1.bf16.xpose.msra.mxu1 %v2916_v30  ;;  %v390_v30 = vld [vmem:[%s3174_s2 + $0xa8] sm:$0xff]  ;;  %v2479_v33 = vld [vmem:[#allocation5 + $0x21c] ss:$24 sps:$4 sm:$0xff]  }
  0xcf   : > { %2073 = vmatprep.subr.bf16.mxu1 %v2920_v32  ;;  %v2415_v32 = vld [vmem:[#allocation5 + $0x10] ss:$24 sps:$4 sm:$0xff]   ;;  %508 = vperm.xlu1 %2292, %v390_v30  }
  0xd0   : > { %503 = vperm.xlu0 %2291, %v389_v43   ;;  %v2495_v30 = vld [vmem:[#allocation5 + $0x278] ss:$24 sps:$4 sm:$0xff]   ;;  %v2499_v43 = vld [vmem:[#allocation5 + $0x2b4] ss:$24 sps:$4 sm:$0xff]  }
  0xd3   : > { %1370 = vmatmul.mubr.bf16.gmra.mrb[28].mxu1 %v2408_v28  ;;  %518 = vperm.xlu1 %2292, %v392_v46   ;;  %v2484_v28 = vld [vmem:[#allocation5 + $0x220] ss:$24 sps:$4 sm:$0xff]   ;;  %v2503_v46 = vld [vmem:[#allocation5 + $0x2dc] ss:$24 sps:$4 sm:$0xff]  }
  0xd4   : > { %1531 = vmatmul.mubr.bf16.gmra.mrb[28].mxu0 %v2409_v36  ;;  %1377 = vmatprep.mubr.bf16.mxu1 %v2413_v38  ;;  %v2485_v36 = vld [vmem:[#allocation5 + $0x24c] ss:$24 sps:$4 sm:$0xff]   ;;  %v2489_v38 = vld [vmem:[#allocation5 + $0x248] ss:$24 sps:$4 sm:$0xff]  }
  0xd5   : > { %1618 = vmatpush1.bf16.xpose.msra.mxu0 %v2410_v37  ;;  %1635 = vmatprep.mubr.bf16.mxu0 %v2417_v39  ;;  %v2487_v37 = vld [vmem:[#allocation5 + $0x254] ss:$24 sps:$4 sm:$0xff]   ;;  %v2490_v39 = vld [vmem:[#allocation5 + $0x250] ss:$24 sps:$4 sm:$0xff]  }
  0xd6   : > { %2081 = vmatpush1.bf16.xpose.msra.mxu1 %v2926_v34  ;;  %v391_v34 = vld [vmem:[%s3174_s2 + $0xb0] sm:$0xff] }
  0xd7   : > { %513 = vperm.xlu0 %2291, %v391_v34   ;;  %528 = vperm.xlu1 %2292, %v394_v47   ;;  %v2505_v34 = vld [vmem:[#allocation5 + $0x2e4] ss:$24 sps:$4 sm:$0xff]   ;;  %v2507_v47 = vld [vmem:[#allocation5 + $0x2d8] ss:$24 sps:$4 sm:$0xff]  }
  0xdb   : > { %1378 = vmatmul.mubr.bf16.gmra.mrb[32].mxu1 %v2418_v42  ;;  %523 = vperm.xlu0 %2291, %v393_v50   ;;  %v2497_v42 = vld [vmem:[#allocation5 + $0x2ac] ss:$24 sps:$4 sm:$0xff]  }
  0xdc   : > { %1636 = vmatmul.mubr.bf16.vlgmr.msra.gmra.mrb[0].mxu0 %v2415_v32  ;;  %1385 = vmatprep.mubr.bf16.mxu1 %v2419_v44  ;;  %v2496_v32 = vld [vmem:[#allocation5 + $0x280] ss:$24 sps:$4 sm:$0xff]  }
  0xdd   : > { %1643 = vmatprep.mubr.bf16.mxu0 %v2421_v45  ;;  %538 = vperm.xlu1 %2292, %v396_v53   ;;  %v2501_v44 = vld [vmem:[#allocation5 + $0x2a8] ss:$24 sps:$4 sm:$0xff]  }
  0xde   : > { %v2502_v45 = vld [vmem:[#allocation5 + $0x2b0] ss:$24 sps:$4 sm:$0xff]  }
  0xdf   : > { %533 = vperm.xlu0 %2291, %v395_v54  }
  0xe1   : > { %548 = vperm.xlu1 %2292, %v398_v55  }
  0xe3   : > { %1386 = vmatmul.mubr.bf16.gmra.mrb[36].mxu1 %v2423_v48  ;;  %543 = vperm.xlu0 %2291, %v397_v58   ;;  %v2508_v48 = vld [vmem:[#allocation5 + $0x2e0] ss:$24 sps:$4 sm:$0xff]  }
  0xe4   : > { %1644 = vmatmul.mubr.bf16.gmra.mrb[4].mxu0 %v2424_v49  ;;  %1393 = vmatprep.mubr.bf16.mxu1 %v2425_v51 }
  0xe5   : > { %1651 = vmatprep.mubr.bf16.mxu0 %v2427_v52  ;;  %558 = vperm.xlu1 %2292, %v400_v61  }
  0xe7   : > { %553 = vperm.xlu0 %2291, %v399_v62  }
  0xeb   : > { %1394 = vmatmul.mubr.bf16.gmra.mrb[40].mxu1 %v2429_v56 }
  0xec   : > { %1652 = vmatmul.mubr.bf16.gmra.mrb[8].mxu0 %v2430_v57  ;;  %1401 = vmatprep.mubr.bf16.mxu1 %v2431_v59 }
  0xed   : > { %1659 = vmatprep.mubr.bf16.mxu0 %v2433_v60 }
  0xf3   : > { %1402 = vmatmul.mubr.bf16.gmra.mrb[44].mxu1 %v2435_v63 }
  0xf4   : > { %1660 = vmatmul.mubr.bf16.gmra.mrb[12].mxu0 %v2436_v0  ;;  %1409 = vmatprep.mubr.bf16.mxu1 %v2437_v1 }
  0xf5   : > { %1667 = vmatprep.mubr.bf16.mxu0 %v2439_v2 }
  0xfb   : > { %1410 = vmatmul.mubr.bf16.gmra.mrb[48].mxu1 %v2441_v3 }
  0xfc   : > { %1668 = vmatmul.mubr.bf16.gmra.mrb[16].mxu0 %v2442_v4  ;;  %1417 = vmatprep.mubr.bf16.mxu1 %v2443_v5 }
  0xfd   : > { %1675 = vmatprep.mubr.bf16.mxu0 %v2445_v6 }
 0x103   : > { %1418 = vmatmul.mubr.bf16.gmra.mrb[52].mxu1 %v2447_v7 }
 0x104   : > { %1676 = vmatmul.mubr.bf16.gmra.mrb[20].mxu0 %v2448_v8  ;;  %1425 = vmatprep.mubr.bf16.mxu1 %v2449_v9 }
 0x105   : > { %1683 = vmatprep.mubr.bf16.mxu0 %v2451_v10 }
 0x10b   : > { %1426 = vmatmul.mubr.bf16.gmra.mrb[56].mxu1 %v2453_v11 }
 0x10c   : > { %1684 = vmatmul.mubr.bf16.gmra.mrb[24].mxu0 %v2454_v12  ;;  %1433 = vmatprep.mubr.bf16.mxu1 %v2455_v13  ;;  %v404_v13 = vpop.permute.xlu0 %403 }
 0x10d   : > { %1691 = vmatprep.mubr.bf16.mxu0 %v2457_v14 }
 0x113   : > { %1434 = vmatmul.mubr.bf16.gmra.mrb[60].mxu1 %v2459_v15 }
 0x114   : > { %1692 = vmatmul.mubr.bf16.gmra.mrb[28].mxu0 %v2460_v16  ;;  %1538 = vmatprep.mubr.bf16.mxu1 %v2463_v17 }
 0x115   : > { %1699 = vmatprep.mubr.bf16.mxu0 %v2464_v18  ;;  %v409_v18 = vpop.permute.xlu0 %408 }
 0x11b   : > { %1539 = vmatmul.mubr.bf16.vlgmr.msra.gmra.mrb[32].mxu1 %v2461_v19 }
 0x11c   : > { %1700 = vmatmul.mubr.bf16.gmra.mrb[32].mxu0 %v2466_v20  ;;  %1546 = vmatprep.mubr.bf16.mxu1 %v2467_v21  ;;  %v414_v20 = vpop.permute.xlu1 %413 }
 0x11d   : > { %1707 = vmatprep.mubr.bf16.mxu0 %v2469_v23 }
 0x123   : > { %1547 = vmatmul.mubr.bf16.gmra.mrb[36].mxu1 %v2471_v25 }
 0x124   : > { %1708 = vmatmul.mubr.bf16.gmra.mrb[36].mxu0 %v2472_v22  ;;  %1554 = vmatprep.mubr.bf16.mxu1 %v2473_v27 }
 0x125   : > { %1715 = vmatprep.mubr.bf16.mxu0 %v2475_v24 }
 0x12b   : > { %1555 = vmatmul.mubr.bf16.gmra.mrb[40].mxu1 %v2477_v29 }
 0x12c   : > { %1716 = vmatmul.mubr.bf16.gmra.mrb[40].mxu0 %v2478_v31  ;;  %1562 = vmatprep.mubr.bf16.mxu1 %v2479_v33  ;;  %v419_v31 = vpop.permute.xlu1 %418 }
 0x12d   : > { %1723 = vmatprep.mubr.bf16.mxu0 %v2481_v35 }
 0x133   : > { %1563 = vmatmul.mubr.bf16.gmra.mrb[44].mxu1 %v2483_v26 }
 0x134   : > { %1724 = vmatmul.mubr.bf16.gmra.mrb[44].mxu0 %v2484_v28  ;;  %1570 = vmatprep.mubr.bf16.mxu1 %v2485_v36 }
 0x135   : > { %1731 = vmatprep.mubr.bf16.mxu0 %v2487_v37 }
 0x13b   : > { %1571 = vmatmul.mubr.bf16.gmra.mrb[48].mxu1 %v2489_v38 }
 0x13c   : > { %1732 = vmatmul.mubr.bf16.gmra.mrb[48].mxu0 %v2490_v39  ;;  %1578 = vmatprep.mubr.bf16.mxu1 %v2491_v40  ;;  %v424_v40 = vpop.permute.xlu0 %423 }
 0x13d   : > { %1739 = vmatprep.mubr.bf16.mxu0 %v2493_v41  ;;  %v429_v41 = vpop.permute.xlu1 %428 }
 0x143   : > { %1579 = vmatmul.mubr.bf16.gmra.mrb[52].mxu1 %v2495_v30 }
 0x144   : > { %1740 = vmatmul.mubr.bf16.gmra.mrb[52].mxu0 %v2496_v32  ;;  %1586 = vmatprep.mubr.bf16.mxu1 %v2497_v42 }
 0x145   : > { %1747 = vmatprep.mubr.bf16.mxu0 %v2499_v43 }
 0x14b   : > { %1587 = vmatmul.mubr.bf16.gmra.mrb[56].mxu1 %v2501_v44 }
 0x14c   : > { %1748 = vmatmul.mubr.bf16.gmra.mrb[56].mxu0 %v2502_v45  ;;  %1594 = vmatprep.mubr.bf16.mxu1 %v2503_v46 }
 0x14d   : > { %1755 = vmatprep.mubr.bf16.mxu0 %v2505_v34 }
 0x153   : > { %1595 = vmatmul.mubr.bf16.gmra.mrb[60].mxu1 %v2507_v47  ;;  %v434_v47 = vpop.permute.xlu0 %433 }
 0x154   : > { %1756 = vmatmul.mubr.bf16.gmra.mrb[60].mxu0 %v2508_v48  ;;  %v439_v48 = vpop.permute.xlu1 %438 }
 0x16e   : > { %v1315_v49 = vpop.f32.mrb[0].mxu1 }
 0x16f   : > { %v1317_v50 = vpop.f32.mrb[1].mxu1  ;;  %v1316_v19 = vadd.f32 %v1315_v49, %v404_v13 }
 0x170   : > { %v1318_v51 = vpop.f32.mrb[2].mxu1 }
 0x171   : > { %v1320_v52 = vpop.f32.mrb[3].mxu1  ;;  %v1319_v23 = vadd.f32 %v1318_v51, %v409_v18 }
 0x176   : > { %v1323_v53 = vpop.f32.mrb[4].mxu1 }
 0x177   : > { %v1325_v54 = vpop.f32.mrb[5].mxu1  ;;  %v1324_v33 = vadd.f32 %v1323_v53, %v414_v20 }
 0x178   : > { %v1326_v55 = vpop.f32.mrb[6].mxu1 }
 0x179   : > { %v1328_v56 = vpop.f32.mrb[7].mxu1  ;;  %v1327_v26 = vadd.f32 %v1326_v55, %v419_v31 }
 0x17e   : > { %v1331_v57 = vpop.f32.mrb[8].mxu1 }
 0x17f   : > { %v1333_v58 = vpop.f32.mrb[9].mxu1  ;;  %v1332_v30 = vadd.f32 %v1331_v57, %v424_v40  ;;  %v444_v57 = vpop.permute.xlu0 %443 }
 0x180   : > { %v1334_v59 = vpop.f32.mrb[10].mxu1  ;;  %v449_v58 = vpop.permute.xlu1 %448 }
 0x181   : > { %v1336_v60 = vpop.f32.mrb[11].mxu1  ;;  %v1335_v42 = vadd.f32 %v1334_v59, %v429_v41 }
 0x186   : > { %v1339_v61 = vpop.f32.mrb[12].mxu1 }
 0x187   : > { %v1341_v62 = vpop.f32.mrb[13].mxu1  ;;  %v1340_v49 = vadd.f32 %v1339_v61, %v434_v47 }
 0x188   : > { %v1342_v63 = vpop.f32.mrb[14].mxu1 }
 0x189   : > { %v1344_v0 = vpop.f32.mrb[15].mxu1  ;;  %v1343_v51 = vadd.f32 %v1342_v63, %v439_v48 }
 0x18e   : > { %v3057_v1 = vpop.f32.mrb[16].mxu1 }
 0x18f   : > { %v1349_v2 = vpop.f32.mrb[17].mxu1  ;;  %v1348_v59 = vadd.f32 %v3057_v1, %v444_v57 }
 0x190   : > { %v3059_v3 = vpop.f32.mrb[18].mxu1 }
 0x191   : > { %v1352_v4 = vpop.f32.mrb[19].mxu1  ;;  %v1351_v62 = vadd.f32 %v3059_v3, %v449_v58 }
 0x196   : > { %v3061_v5 = vpop.f32.mrb[20].mxu1 }
 0x197   : > { %v1357_v6 = vpop.f32.mrb[21].mxu1 }
 0x198   : > { %v3063_v7 = vpop.f32.mrb[22].mxu1  ;;  %v454_v6 = vpop.permute.xlu0 %453 }
 0x199   : > { %v1360_v8 = vpop.f32.mrb[23].mxu1 }
 0x19a   : > { %v459_v8 = vpop.permute.xlu1 %458 }
 0x19b   : > { %v1359_v13 = vadd.f32 %v3063_v7, %v459_v8 }
 0x19e   : > { %v3065_v9 = vpop.f32.mrb[24].mxu1  ;;  %v469_v20 = vpop.permute.xlu1 %468 }
 0x19f   : > { %v1365_v10 = vpop.f32.mrb[25].mxu1 }
 0x1a0   : > { %v3067_v11 = vpop.f32.mrb[26].mxu1  ;;  %v1356_v10 = vadd.f32 %v3061_v5, %v454_v6 }
 0x1a1   : > { %v1368_v12 = vpop.f32.mrb[27].mxu1 }
 0x1a2   : > { %v479_v31 = vpop.permute.xlu1 %478 }
 0x1a6   : > { %v3069_v14 = vpop.f32.mrb[28].mxu1 }
 0x1a7   : > { %v1373_v15 = vpop.f32.mrb[29].mxu1 }
 0x1a8   : > { %v3071_v16 = vpop.f32.mrb[30].mxu1 }
 0x1a9   : > { %v1376_v17 = vpop.f32.mrb[31].mxu1 }
 0x1af   : > { %v1637_v21 = vpop.f32.mrb[0].mxu0 }
 0x1b0   : > { %v2083_v25 = vadd.f32 %v1637_v21, %v1316_v19  ;;  %v1639_v22 = vpop.f32.mrb[1].mxu0  ;;  %v464_v19 = vpop.permute.xlu0 %463 }
 0x1b1   : > { %v1640_v27 = vpop.f32.mrb[2].mxu0  ;;  %v1364_v21 = vadd.f32 %v3065_v9, %v464_v19 }
 0x1b2   : > { %1764 = vst [vmem:[%s3074_s10] sm:$0xff] %v2083_v25  ;;  %v2085_v24 = vadd.f32 %v1640_v27, %v1319_v23  ;;  %v1642_v29 = vpop.f32.mrb[3].mxu0  ;;  %v1367_v25 = vadd.f32 %v3067_v11, %v469_v20 }
 0x1b4   : > { %1765 = vst [vmem:[%s3074_s10 + $0x8] sm:$0xff] %v2085_v24  ;;  %v474_v29 = vpop.permute.xlu0 %473 }
 0x1b7   : > { %v1645_v35 = vpop.f32.mrb[4].mxu0 }
 0x1b8   : > { %v2087_v28 = vadd.f32 %v1645_v35, %v1324_v33  ;;  %v1647_v36 = vpop.f32.mrb[5].mxu0  ;;  %v1372_v33 = vadd.f32 %v3069_v14, %v474_v29 }
 0x1b9   : > { %v1648_v37 = vpop.f32.mrb[6].mxu0 }
 0x1ba   : > { %1766 = vst [vmem:[%s3074_s10 + $0x10] sm:$0xff] %v2087_v28  ;;  %v2089_v38 = vadd.f32 %v1648_v37, %v1327_v26  ;;  %v1650_v39 = vpop.f32.mrb[7].mxu0  ;;  %v1375_v26 = vadd.f32 %v3071_v16, %v479_v31 }
 0x1bb   : > { %v484_v39 = vpop.permute.xlu0 %483 }
 0x1bc   : > { %1767 = vst [vmem:[%s3074_s10 + $0x18] sm:$0xff] %v2089_v38  ;;  %v489_v38 = vpop.permute.xlu1 %488 }
 0x1bf   : > { %v1653_v32 = vpop.f32.mrb[8].mxu0  ;;  %v494_v48 = vpop.permute.xlu0 %493 }
 0x1c0   : > { %v2091_v43 = vadd.f32 %v1653_v32, %v1332_v30  ;;  %v1655_v44 = vpop.f32.mrb[9].mxu0  ;;  %v499_v47 = vpop.permute.xlu1 %498 }
 0x1c1   : > { %v1656_v45 = vpop.f32.mrb[10].mxu0 }
 0x1c2   : > { %1768 = vst [vmem:[%s3074_s10 + $0x20] sm:$0xff] %v2091_v43  ;;  %v2093_v46 = vadd.f32 %v1656_v45, %v1335_v42  ;;  %v1658_v34 = vpop.f32.mrb[11].mxu0 }
 0x1c4   : > { %1769 = vst [vmem:[%s3074_s10 + $0x28] sm:$0xff] %v2093_v46 }
 0x1c7   : > { %v1661_v50 = vpop.f32.mrb[12].mxu0 }
 0x1c8   : > { %v2095_v52 = vadd.f32 %v1661_v50, %v1340_v49  ;;  %v1663_v53 = vpop.f32.mrb[13].mxu0 }
 0x1c9   : > { %v1664_v54 = vpop.f32.mrb[14].mxu0 }
 0x1ca   : > { %1770 = vst [vmem:[%s3074_s10 + $0x30] sm:$0xff] %v2095_v52  ;;  %v2097_v55 = vadd.f32 %v1664_v54, %v1343_v51  ;;  %v1666_v56 = vpop.f32.mrb[15].mxu0 }
 0x1cc   : > { %1771 = vst [vmem:[%s3074_s10 + $0x38] sm:$0xff] %v2097_v55 }
 0x1cf   : > { %v1669_v60 = vpop.f32.mrb[16].mxu0 }
 0x1d0   : > { %v2099_v61 = vadd.f32 %v1669_v60, %v1348_v59  ;;  %v1671_v0 = vpop.f32.mrb[17].mxu0 }
 0x1d1   : > { %v1672_v63 = vpop.f32.mrb[18].mxu0 }
 0x1d2   : > { %1772 = vst [vmem:[%s3074_s10 + $0x40] sm:$0xff] %v2099_v61  ;;  %v2101_v2 = vadd.f32 %v1672_v63, %v1351_v62  ;;  %v1674_v4 = vpop.f32.mrb[19].mxu0  ;;  %v509_v62 = vpop.permute.xlu1 %508 }
 0x1d3   : > { %v504_v61 = vpop.permute.xlu0 %503 }
 0x1d4   : > { %1773 = vst [vmem:[%s3074_s10 + $0x48] sm:$0xff] %v2101_v2 }
 0x1d7   : > { %v1677_v12 = vpop.f32.mrb[20].mxu0 }
 0x1d8   : > { %v2103_v1 = vadd.f32 %v1677_v12, %v1356_v10  ;;  %v1679_v15 = vpop.f32.mrb[21].mxu0 }
 0x1d9   : > { %v1680_v3 = vpop.f32.mrb[22].mxu0 }
 0x1da   : > { %1774 = vst [vmem:[%s3074_s10 + $0x50] sm:$0xff] %v2103_v1  ;;  %v2105_v17 = vadd.f32 %v1680_v3, %v1359_v13  ;;  %v1682_v18 = vpop.f32.mrb[23].mxu0 }
 0x1db   : > { %v514_v18 = vpop.permute.xlu0 %513 }
 0x1dc   : > { %1775 = vst [vmem:[%s3074_s10 + $0x58] sm:$0xff] %v2105_v17  ;;  %v519_v17 = vpop.permute.xlu1 %518 }
 0x1df   : > { %v1685_v23 = vpop.f32.mrb[24].mxu0 }
 0x1e0   : > { %v2107_v5 = vadd.f32 %v1685_v23, %v1364_v21  ;;  %v1687_v22 = vpop.f32.mrb[25].mxu0 }
 0x1e1   : > { %v1688_v7 = vpop.f32.mrb[26].mxu0 }
 0x1e2   : > { %1776 = vst [vmem:[%s3074_s10 + $0x60] sm:$0xff] %v2107_v5  ;;  %v2109_v27 = vadd.f32 %v1688_v7, %v1367_v25  ;;  %v1690_v24 = vpop.f32.mrb[27].mxu0 }
 0x1e4   : > { %1777 = vst [vmem:[%s3074_s10 + $0x68] sm:$0xff] %v2109_v27 }
 0x1e7   : > { %v1693_v35 = vpop.f32.mrb[28].mxu0 }
 0x1e8   : > { %v2111_v9 = vadd.f32 %v1693_v35, %v1372_v33  ;;  %v1695_v28 = vpop.f32.mrb[29].mxu0  ;;  %v529_v33 = vpop.permute.xlu1 %528 }
 0x1e9   : > { %v1696_v36 = vpop.f32.mrb[30].mxu0  ;;  %v524_v35 = vpop.permute.xlu0 %523 }
 0x1ea   : > { %1778 = vst [vmem:[%s3074_s10 + $0x70] sm:$0xff] %v2111_v9  ;;  %v2113_v11 = vadd.f32 %v1696_v36, %v1375_v26  ;;  %v1698_v37 = vpop.f32.mrb[31].mxu0 }
 0x1ec   : > { %1779 = vst [vmem:[%s3074_s10 + $0x78] sm:$0xff] %v2113_v11 }
 0x1ee   : > { %v1540_v40 = vpop.f32.mrb[32].mxu1 }
 0x1ef   : > { %v1701_v41 = vpop.f32.mrb[32].mxu0  ;;  %v2114_v30 = vadd.f32 %v1540_v40, %v484_v39  ;;  %v1542_v32 = vpop.f32.mrb[33].mxu1 }
 0x1f0   : > { %v1703_v42 = vpop.f32.mrb[33].mxu0  ;;  %v1543_v14 = vpop.f32.mrb[34].mxu1 }
 0x1f1   : > { %v1704_v43 = vpop.f32.mrb[34].mxu0  ;;  %v2115_v44 = vadd.f32 %v2114_v30, %v1701_v41  ;;  %v2116_v16 = vadd.f32 %v1543_v14, %v489_v38  ;;  %v1545_v45 = vpop.f32.mrb[35].mxu1 }
 0x1f2   : > { %v1706_v46 = vpop.f32.mrb[35].mxu0  ;;  %v539_v42 = vpop.permute.xlu1 %538 }
 0x1f3   : > { %1780 = vst [vmem:[%s3074_s10 + $0x80] sm:$0xff] %v2115_v44  ;;  %v2117_v34 = vadd.f32 %v2116_v16, %v1704_v43  ;;  %v534_v14 = vpop.permute.xlu0 %533 }
 0x1f5   : > { %1781 = vst [vmem:[%s3074_s10 + $0x88] sm:$0xff] %v2117_v34 }
 0x1f6   : > { %v1548_v49 = vpop.f32.mrb[36].mxu1 }
 0x1f7   : > { %v1709_v50 = vpop.f32.mrb[36].mxu0  ;;  %v2118_v51 = vadd.f32 %v1548_v49, %v494_v48  ;;  %v1550_v52 = vpop.f32.mrb[37].mxu1 }
 0x1f8   : > { %v1711_v53 = vpop.f32.mrb[37].mxu0  ;;  %v1551_v54 = vpop.f32.mrb[38].mxu1 }
 0x1f9   : > { %v1712_v55 = vpop.f32.mrb[38].mxu0  ;;  %v2119_v56 = vadd.f32 %v2118_v51, %v1709_v50  ;;  %v2120_v57 = vadd.f32 %v1551_v54, %v499_v47  ;;  %v1553_v58 = vpop.f32.mrb[39].mxu1 }
 0x1fa   : > { %v1714_v59 = vpop.f32.mrb[39].mxu0  ;;  %v549_v53 = vpop.permute.xlu1 %548 }
 0x1fb   : > { %1782 = vst [vmem:[%s3074_s10 + $0x90] sm:$0xff] %v2119_v56  ;;  %v2121_v60 = vadd.f32 %v2120_v57, %v1712_v55  ;;  %v544_v54 = vpop.permute.xlu0 %543 }
 0x1fd   : > { %1783 = vst [vmem:[%s3074_s10 + $0x98] sm:$0xff] %v2121_v60 }
 0x1fe   : > { %v1556_v0 = vpop.f32.mrb[40].mxu1 }
 0x1ff   : > { %v1717_v63 = vpop.f32.mrb[40].mxu0  ;;  %v2122_v2 = vadd.f32 %v1556_v0, %v504_v61  ;;  %v1558_v4 = vpop.f32.mrb[41].mxu1 }
 0x200   : > { %v1719_v6 = vpop.f32.mrb[41].mxu0  ;;  %v1559_v8 = vpop.f32.mrb[42].mxu1 }
 0x201   : > { %v1720_v10 = vpop.f32.mrb[42].mxu0  ;;  %v2123_v12 = vadd.f32 %v2122_v2, %v1717_v63  ;;  %v2124_v13 = vadd.f32 %v1559_v8, %v509_v62  ;;  %v1561_v1 = vpop.f32.mrb[43].mxu1 }
 0x202   : > { %v1722_v15 = vpop.f32.mrb[43].mxu0  ;;  %v559_v6 = vpop.permute.xlu1 %558 }
 0x203   : > { %1784 = vst [vmem:[%s3074_s10 + $0xa0] sm:$0xff] %v2123_v12  ;;  %v2125_v3 = vadd.f32 %v2124_v13, %v1720_v10  ;;  %v554_v8 = vpop.permute.xlu0 %553 }
 0x205   : > { %1785 = vst [vmem:[%s3074_s10 + $0xa8] sm:$0xff] %v2125_v3 }
 0x206   : > { %v1564_v19 = vpop.f32.mrb[44].mxu1 }
 0x207   : > { %v1725_v20 = vpop.f32.mrb[44].mxu0  ;;  %v2126_v21 = vadd.f32 %v1564_v19, %v514_v18  ;;  %v1566_v23 = vpop.f32.mrb[45].mxu1 }
 0x208   : > { %v1727_v25 = vpop.f32.mrb[45].mxu0  ;;  %v1567_v5 = vpop.f32.mrb[46].mxu1 }
 0x209   : > { %v1728_v22 = vpop.f32.mrb[46].mxu0  ;;  %v2127_v7 = vadd.f32 %v2126_v21, %v1725_v20  ;;  %v2128_v27 = vadd.f32 %v1567_v5, %v519_v17  ;;  %v1569_v24 = vpop.f32.mrb[47].mxu1 }
 0x20a   : > { %v1730_v29 = vpop.f32.mrb[47].mxu0 }
 0x20b   : > { %1786 = vst [vmem:[%s3074_s10 + $0xb0] sm:$0xff] %v2127_v7  ;;  %v2129_v31 = vadd.f32 %v2128_v27, %v1728_v22 }
 0x20d   : > { %1787 = vst [vmem:[%s3074_s10 + $0xb8] sm:$0xff] %v2129_v31 }
 0x20e   : > { %v1572_v26 = vpop.f32.mrb[48].mxu1 }
 0x20f   : > { %v1733_v9 = vpop.f32.mrb[48].mxu0  ;;  %v2130_v28 = vadd.f32 %v1572_v26, %v524_v35  ;;  %v1574_v36 = vpop.f32.mrb[49].mxu1 }
 0x210   : > { %v1735_v11 = vpop.f32.mrb[49].mxu0  ;;  %v1575_v37 = vpop.f32.mrb[50].mxu1 }
 0x211   : > { %v1736_v38 = vpop.f32.mrb[50].mxu0  ;;  %v2131_v39 = vadd.f32 %v2130_v28, %v1733_v9  ;;  %v2132_v40 = vadd.f32 %v1575_v37, %v529_v33  ;;  %v1577_v41 = vpop.f32.mrb[51].mxu1 }
 0x212   : > { %v1738_v30 = vpop.f32.mrb[51].mxu0 }
 0x213   : > { %1788 = vst [vmem:[%s3074_s10 + $0xc0] sm:$0xff] %v2131_v39  ;;  %v2133_v32 = vadd.f32 %v2132_v40, %v1736_v38 }
 0x215   : > { %1789 = vst [vmem:[%s3074_s10 + $0xc8] sm:$0xff] %v2133_v32 }
 0x216   : > { %v1580_v43 = vpop.f32.mrb[52].mxu1 }
 0x217   : > { %v1741_v44 = vpop.f32.mrb[52].mxu0  ;;  %v2134_v16 = vadd.f32 %v1580_v43, %v534_v14  ;;  %v1582_v45 = vpop.f32.mrb[53].mxu1 }
 0x218   : > { %v1743_v46 = vpop.f32.mrb[53].mxu0  ;;  %v1583_v34 = vpop.f32.mrb[54].mxu1 }
 0x219   : > { %v1744_v47 = vpop.f32.mrb[54].mxu0  ;;  %v2135_v48 = vadd.f32 %v2134_v16, %v1741_v44  ;;  %v2136_v49 = vadd.f32 %v1583_v34, %v539_v42  ;;  %v1585_v50 = vpop.f32.mrb[55].mxu1 }
 0x21a   : > { %v1746_v51 = vpop.f32.mrb[55].mxu0 }
 0x21b   : > { %1790 = vst [vmem:[%s3074_s10 + $0xd0] sm:$0xff] %v2135_v48  ;;  %v2137_v52 = vadd.f32 %v2136_v49, %v1744_v47 }
 0x21d   : > { %1791 = vst [vmem:[%s3074_s10 + $0xd8] sm:$0xff] %v2137_v52 }
 0x21e   : > { %v1588_v55 = vpop.f32.mrb[56].mxu1 }
 0x21f   : > { %v1749_v56 = vpop.f32.mrb[56].mxu0  ;;  %v2138_v57 = vadd.f32 %v1588_v55, %v544_v54  ;;  %v1590_v58 = vpop.f32.mrb[57].mxu1 }
 0x220   : > { %v1751_v59 = vpop.f32.mrb[57].mxu0  ;;  %v1591_v60 = vpop.f32.mrb[58].mxu1 }
 0x221   : > { %v1752_v62 = vpop.f32.mrb[58].mxu0  ;;  %v2139_v61 = vadd.f32 %v2138_v57, %v1749_v56  ;;  %v2140_v0 = vadd.f32 %v1591_v60, %v549_v53  ;;  %v1593_v63 = vpop.f32.mrb[59].mxu1 }
 0x222   : > { %v1754_v2 = vpop.f32.mrb[59].mxu0 }
 0x223   : > { %1792 = vst [vmem:[%s3074_s10 + $0xe0] sm:$0xff] %v2139_v61  ;;  %v2141_v4 = vadd.f32 %v2140_v0, %v1752_v62 }
 0x225   : > { %1793 = vst [vmem:[%s3074_s10 + $0xe8] sm:$0xff] %v2141_v4 }
 0x226   : > { %v1596_v10 = vpop.f32.mrb[60].mxu1 }
 0x227   : > { %v1757_v12 = vpop.f32.mrb[60].mxu0  ;;  %v2142_v13 = vadd.f32 %v1596_v10, %v554_v8  ;;  %v1598_v1 = vpop.f32.mrb[61].mxu1 }
 0x228   : > { %v1759_v15 = vpop.f32.mrb[61].mxu0  ;;  %v1599_v3 = vpop.f32.mrb[62].mxu1 }
 0x229   : > { %v1760_v17 = vpop.f32.mrb[62].mxu0  ;;  %v2143_v18 = vadd.f32 %v2142_v13, %v1757_v12  ;;  %v2144_v19 = vadd.f32 %v1599_v3, %v559_v6  ;;  %v1601_v20 = vpop.f32.mrb[63].mxu1 }
 0x22a   : > { %v1762_v21 = vpop.f32.mrb[63].mxu0 }
 0x22b   : > { %1794 = vst [vmem:[%s3074_s10 + $0xf0] sm:$0xff] %v2143_v18  ;;  %v2145_v23 = vadd.f32 %v2144_v19, %v1760_v17 }
 0x22d   : > { %1795 = vst [vmem:[%s3074_s10 + $0xf8] sm:$0xff] %v2145_v23 }
 0x22e   : > { %2580 = shalt.err (!%p2577_p5)
}
 0x22f   : > { %s2581_s4 = scalar_lea.hbm %s3119_s19, 4096  ;;  %s2585_s20 = scalar_lea.hbm %s3175_s3, 8192 }
 0x230   : > { %p2582_p9 = scmp.ne.s32.totalorder %s3119_s19, %s2581_s4  ;;  %p2586_p3 = scmp.lt.u32.totalorder %s3119_s19, %s3175_s3 }
 0x231   : > { %p2587_p7 = scmp.lt.u32.totalorder %s2585_s20, %s2581_s4  ;;  %p2589_p4 = scmp.lt.u32.totalorder %s2581_s4, %s3119_s19 }
 0x232   : > { %p2583_p1 = pnand %p2582_p9, %p2778_p10 }
 0x233   : > { %p2588_p11 = por %p2587_p7, %p2586_p3 }
 0x234   : > { %p2584_p2 = pneg %p2583_p1 }
 0x235   : > { %p2590_p6 = por %p2589_p4, %p2588_p11 }
 0x237   : > { %p2591_p8 = pnand %p2590_p6, %p2584_p2 }
 0x239   : > { %2594 = shalt.err (!%p2591_p8)
}
 0x23a   : > { %s2661_s10 = smov 128   ;;  %s2662_s11 = smov 8  }
 0x23b   : > { %2219 = dma.vmem_to_hbm [thread:$0]  (%p2778_p10), %s3121_s7, 4096, %s3119_s19, %s1797_s15, %s2661_s10, %s2661_s10, %s2662_s11  }
 0x23c PF: > { %s1826_s8 = sand.u32 1, %s2633_s12   ;;  %p3192_p12 = scmp.ne.s32.totalorder %s3183_s23, 0 }
 0x23d   : > { %p3193_p13 = scmp.ge.s32.totalorder %s2653_s17, 2  ;;  %s1827_s18 = scalar_lea.sflag [#allocation4], %s1826_s8 }
 0x23f   : > { %p2230_p0 = pnand %p3193_p13, %p3192_p12 }
 0x241   : > { %2628 = dma.done.wait (!%p2230_p0), %s1827_s18, 4096  }
 0x242   : > { %2630 = vsyncadd (!%p2230_p0), %s1827_s18, 4294963200  ;;  %s20_s17 = sadd.s32 1, %s2653_s17   ;;  %s3194_s12 = smov %s2637_s13 }
 0x243   : > { %p17_p5 = scmp.ge.s32.totalorder %s20_s17, 4   ;;  %s3195_s13 = smov %s2641_s14 }
 0x244   : > { %s3196_s14 = smov %s2787_s5  ;;  %s3197_s15 = smov %s2649_s16 }
 0x245   : > { %s3198_s16 = smov %s3200_s28  ;;  %19 = sbr.rel (!%p17_p5) target bundleno = 7 (0x7), region = 81 }
 0x24c   :  { %1832 = vsyncpa [#allocation3], 1 }
 0x24d   :  { %1834 = vsyncpa [#allocation3 + $0x1], 1 }
 0x24e   :  { %1835 = vsyncpa [#allocation6], 1 }
 0x24f   :  { %1836 = vsyncpa [#allocation4], 1 }
 0x250   :  { %1838 = vsyncpa [#allocation4 + $0x1], 1 }

</bundles_post_ra>
